<compile_context>
chip_gen: v5e
topology: v5e:2x2
jax: 0.10.0
libtpu: 0.0.40
codegen_flags: <defaults>
</compile_context>

<pallas_src>
import math
from functools import partial

import jax
import jax.numpy as jnp
from jax import lax
from jax.experimental import pallas as pl
from jax.experimental.pallas import tpu as pltpu


def _round_up(x, m):
    return (x + m - 1) // m * m


# ----------------------------------------------------------------------------
# Shared epilogue: bias + activation + pixelnorm, on an f32 tile.
# ----------------------------------------------------------------------------
def _epilogue(h, bias, *, n_real, eps, act, pixelnorm):
    h = h + bias.astype(jnp.float32)
    if act == "lrelu":
        h = jnp.where(h > 0, h, 0.2 * h)
    elif act == "relu":
        h = jnp.maximum(h, 0.0)
    if pixelnorm:
        # Padded feature columns are exactly zero (zero weight cols + zero bias
        # + f(0)==0 for None/relu/lrelu), so sum / n_real is the mean over the
        # REAL out_channels.
        ssq = jnp.sum(h * h, axis=-1, keepdims=True)
        h = h * lax.rsqrt(ssq * (1.0 / n_real) + eps)
    return h


# ----------------------------------------------------------------------------
# Kernel A: single K block (common case) — no accumulator scratch.
# ----------------------------------------------------------------------------
def _fuconv2d_kernel_fused(x_ref, w_ref, b_ref, o_ref, *,
                           n_real, eps, act, pixelnorm):
    x = x_ref[...].astype(w_ref.dtype)          # feed MXU in storage (bf16) dtype
    h = jnp.dot(x, w_ref[...], preferred_element_type=jnp.float32)
    h = _epilogue(h, b_ref[...], n_real=n_real, eps=eps, act=act,
                  pixelnorm=pixelnorm)
    o_ref[...] = h.astype(o_ref.dtype)


# ----------------------------------------------------------------------------
# Kernel B: K-tiled reduction with f32 accumulator.  The weight is either
# fully resident (sliced in-kernel with pl.ds) or streamed as (tk, cout) tiles.
# ----------------------------------------------------------------------------
def _fuconv2d_kernel_ktiled(x_ref, w_ref, b_ref, o_ref, acc_ref, *,
                            tk, w_resident, n_real, eps, act, pixelnorm):
    k = pl.program_id(1)

    @pl.when(k == 0)
    def _init():
        acc_ref[...] = jnp.zeros_like(acc_ref)

    x = x_ref[...].astype(w_ref.dtype)
    if w_resident:
        start = pl.multiple_of(k * tk, 128)
        w = w_ref[pl.ds(start, tk), :]
    else:
        w = w_ref[...]
    acc_ref[...] += jnp.dot(x, w, preferred_element_type=jnp.float32)

    @pl.when(k == pl.num_programs(1) - 1)
    def _finalize():
        h = _epilogue(acc_ref[...], b_ref[...], n_real=n_real, eps=eps,
                      act=act, pixelnorm=pixelnorm)
        o_ref[...] = h.astype(o_ref.dtype)


# ----------------------------------------------------------------------------
# Host-side parameter prep (one-time, outside the hot path)
# ----------------------------------------------------------------------------
def prepare_fuconv2d_params(weight, bias, c, *, compute_dtype=jnp.bfloat16,
                            lane=128):
    """Fold wscale `c` into the weight (in f32, BEFORE any narrow cast),
    transpose [Cout, Cin] -> [Cin, Cout], zero-pad Cout to a multiple of 128
    and Cin to a multiple of 128 (512 for large Cin so K tiling stays coarse),
    then cast the weight once to `compute_dtype` (bf16 by default -> MXU peak
    + half the weight HBM bytes)."""
    Cout, Cin = weight.shape
    kgrain = lane if Cin <= 512 else 512
    cin_p = _round_up(Cin, kgrain)
    cout_p = _round_up(Cout, lane)
    w_t = jnp.transpose(weight.astype(jnp.float32) * c)      # [Cin, Cout]
    w_t = jnp.pad(w_t, ((0, cin_p - Cin), (0, cout_p - Cout)))
    w_t = w_t.astype(compute_dtype)
    b2 = jnp.pad(bias.astype(jnp.float32), (0, cout_p - Cout)).reshape(1, cout_p)
    return w_t, b2, Cout


# ----------------------------------------------------------------------------
# Pallas wrapper
# ----------------------------------------------------------------------------
def fuconv2d(x, w_t, b2, out_features, *, eps=1e-8, act=None, pixelnorm=False,
             tm_max=512, tk_max=512, k_block=None, vmem_budget_bytes=None):
    """x: [B, Cin]; w_t: [Cin_pad, Cout_pad] (prepared); b2: [1, Cout_pad].

    k_block / vmem_budget_bytes are tuning/testing overrides (force K tiling /
    force the fallback streamed-weight path)."""
    assert act in (None, "relu", "lrelu"), \
        "pixelnorm padding relies on f(0)==0 activations"
    B, Cin = x.shape
    cin_p, cout_p = w_t.shape
    assert Cin <= cin_p and cin_p % 128 == 0 and cout_p % 128 == 0
    assert b2.shape == (1, cout_p)

    # ---- generation-aware VMEM limits -----------------------------------
    try:
        info = pltpu.get_tpu_info()
        vmem_cap = int(getattr(info, "vmem_capacity_bytes", 0)) or (64 << 20)
    except Exception:
        vmem_cap = 64 << 20                      # conservative fallback
    budget = int(vmem_budget_bytes) if vmem_budget_bytes is not None \
        else (vmem_cap * 7) // 10                # tile-selection budget (~70%)
    vmem_limit = (vmem_cap * 3) // 4             # compiler scoped limit (~75%)

    xb = jnp.dtype(x.dtype).itemsize
    wb = jnp.dtype(w_t.dtype).itemsize
    ob = xb                                      # output in x dtype

    # ---- tile selection ---------------------------------------------------
    sub = 16 if x.dtype == jnp.bfloat16 else 8   # dtype-aware sublane packing
    tm = min(_round_up(B, sub), tm_max)
    # v7x megacore: ensure >=2 parallel M tiles when each half keeps >=128 rows.
    if _round_up(B, tm) // tm == 1 and tm >= 256:
        tm = _round_up((tm + 1) // 2, sub)

    force_ktile = (k_block is not None) and (k_block < cin_p)
    if force_ktile:
        assert k_block % 128 == 0 and cin_p % k_block == 0

    def _fits(tm_, tk_, w_resident, with_acc):
        f = 2 * tm_ * tk_ * xb                               # x (double-buffered)
        f += 2 * (cin_p if w_resident else tk_) * cout_p * wb  # weight buffers
        f += 2 * tm_ * cout_p * ob                           # out (double-buffered)
        f += 2 * cout_p * 4                                  # bias
        if with_acc:
            f += tm_ * cout_p * 4                            # f32 accumulator
        return f <= budget

    if not force_ktile and not _fits(tm, cin_p, True, False):
        # Shrink the batch tile before giving up on the single-K layout.
        floor = max(sub, 128)
        while tm > floor and not _fits(tm, cin_p, True, False):
            tm = max(_round_up(tm // 2, sub), floor)
            if tm == floor:
                break

    if not force_ktile and _fits(tm, cin_p, True, False):
        tk, w_res = cin_p, True                  # weight DMA'd exactly once
    else:
        if force_ktile:
            tk = k_block
        else:
            tk = min(_round_up(tk_max, 128), cin_p)
            while cin_p % tk:                    # cin_p is a multiple of 512
                tk -= 128                        # for large Cin, so no collapse
        w_res = _fits(tm, tk, True, True)        # keep weight resident if possible
    k_tiles = cin_p // tk

    b_p = _round_up(B, tm)
    m_tiles = b_p // tm

    # ---- pad activations only when required (see TODO at top) -------------
    x_p = x
    if (b_p, cin_p) != (B, Cin):
        x_p = jnp.pad(x, ((0, b_p - B), (0, cin_p - Cin)))

    common = dict(n_real=float(out_features), eps=float(eps), act=act,
                  pixelnorm=pixelnorm)

    if k_tiles == 1:
        out_p = pl.pallas_call(
            partial(_fuconv2d_kernel_fused, **common),
            out_shape=jax.ShapeDtypeStruct((b_p, cout_p), x.dtype),
            grid=(m_tiles,),
            in_specs=[
                pl.BlockSpec((tm, cin_p), lambda i: (i, 0)),        # x tile
                pl.BlockSpec((cin_p, cout_p), lambda i: (0, 0)),    # weight (resident)
                pl.BlockSpec((1, cout_p), lambda i: (0, 0)),        # bias
            ],
            out_specs=pl.BlockSpec((tm, cout_p), lambda i: (i, 0)),
            compiler_params=pltpu.CompilerParams(
                dimension_semantics=("parallel",),
                vmem_limit_bytes=vmem_limit),
        )(x_p, w_t, b2)
    else:
        if w_res:
            w_spec = pl.BlockSpec((cin_p, cout_p), lambda i, k: (0, 0))
        else:
            w_spec = pl.BlockSpec((tk, cout_p), lambda i, k: (k, 0))
        out_p = pl.pallas_call(
            partial(_fuconv2d_kernel_ktiled, tk=tk, w_resident=w_res, **common),
            out_shape=jax.ShapeDtypeStruct((b_p, cout_p), x.dtype),
            grid=(m_tiles, k_tiles),
            in_specs=[
                pl.BlockSpec((tm, tk), lambda i, k: (i, k)),        # x tile
                w_spec,                                             # weight
                pl.BlockSpec((1, cout_p), lambda i, k: (0, 0)),     # bias
            ],
            out_specs=pl.BlockSpec((tm, cout_p), lambda i, k: (i, 0)),
            scratch_shapes=[pltpu.VMEM((tm, cout_p), jnp.float32)],
            compiler_params=pltpu.CompilerParams(
                dimension_semantics=("parallel", "arbitrary"),
                vmem_limit_bytes=vmem_limit),
        )(x_p, w_t, b2)

    return out_p[:B, :out_features]


# ----------------------------------------------------------------------------
# Parameter init mirroring the PyTorch module's __init__
# ----------------------------------------------------------------------------
def init_fuconv2d_params(key, in_channels, out_channels, *, wscale=True, gain=1.0):
    kw, kb = jax.random.split(key)
    # kaiming_normal_ default: fan_in, leaky_relu(a=0) -> std = sqrt(2 / fan_in)
    std = math.sqrt(2.0 / in_channels)
    weight = jax.random.normal(kw, (out_channels, in_channels), jnp.float32) * std
    if wscale:
        c = gain / math.sqrt(in_channels)
        weight = weight / c
    else:
        c = 1.0
    # nn.Linear default bias init: U(-1/sqrt(fan_in), 1/sqrt(fan_in))
    bound = 1.0 / math.sqrt(in_channels)
    bias = jax.random.uniform(kb, (out_channels,), jnp.float32, -bound, bound)
    return weight, bias, c


def fuconv2d_ref(x, weight, bias, *, c, eps=1e-8, act=None, pixelnorm=False):
    """Pure-JAX reference mirroring the PyTorch forward."""
    h = x * c
    h = h @ weight.T + bias
    if act == "lrelu":
        h = jnp.where(h > 0, h, 0.2 * h)
    elif act == "relu":
        h = jnp.maximum(h, 0.0)
    if pixelnorm:
        mean = jnp.mean(h * h, axis=1, keepdims=True)
        h = h * lax.rsqrt(mean + eps)
    return h


if __name__ == "__main__":
    key = jax.random.PRNGKey(0)

    # --- test 1: toy shape, f32 weights, lrelu + pixelnorm (tight tol) ------
    k_x, k_p, key = jax.random.split(key, 3)
    B, Cin, Cout = 8, 32, 64
    x = jax.random.normal(k_x, (B, Cin), jnp.float32)
    weight, bias, c = init_fuconv2d_params(k_p, Cin, Cout, wscale=True, gain=1.0)

    w_t32, b2, n_out = prepare_fuconv2d_params(weight, bias, c,
                                               compute_dtype=jnp.float32)
    out = fuconv2d(x, w_t32, b2, n_out, eps=1e-8, act="lrelu", pixelnorm=True)
    out = jax.block_until_ready(out)
    ref = fuconv2d_ref(x, weight, bias, c=c, eps=1e-8, act="lrelu", pixelnorm=True)
    assert out.shape == (B, Cout)
    assert jnp.allclose(out, ref, atol=1e-4, rtol=1e-4)

    # --- test 2: same shape, default bf16 MXU operands (loose tol) ----------
    w_t16, b2, n_out = prepare_fuconv2d_params(weight, bias, c)   # bf16 default
    out = fuconv2d(x, w_t16, b2, n_out, eps=1e-8, act="lrelu", pixelnorm=True)
    out = jax.block_until_ready(out)
    assert out.shape == (B, Cout)
    assert jnp.allclose(out, ref, atol=3e-2, rtol=3e-2)

    # --- test 3: forced K-tiled path with resident weight (pl.ds slicing) ---
    k_x, k_p, key = jax.random.split(key, 3)
    B, Cin, Cout = 40, 384, 128
    x = jax.random.normal(k_x, (B, Cin), jnp.float32)
    weight, bias, c = init_fuconv2d_params(k_p, Cin, Cout, wscale=True, gain=1.0)
    w_t32, b2, n_out = prepare_fuconv2d_params(weight, bias, c,
                                               compute_dtype=jnp.float32)
    out = fuconv2d(x, w_t32, b2, n_out, eps=1e-8, act="relu", pixelnorm=False,
                   k_block=128)                       # grid (1, 3), resident W
    out = jax.block_until_ready(out)
    ref = fuconv2d_ref(x, weight, bias, c=c, eps=1e-8, act="relu", pixelnorm=False)
    assert out.shape == (B, Cout)
    assert jnp.allclose(out, ref, atol=1e-4, rtol=1e-4)

    # --- test 4: fallback streamed-weight path (tiny VMEM budget override) --
    out = fuconv2d(x, w_t32, b2, n_out, eps=1e-8, act="relu", pixelnorm=False,
                   tk_max=128, vmem_budget_bytes=64 * 1024)
    out = jax.block_until_ready(out)
    assert out.shape == (B, Cout)
    assert jnp.allclose(out, ref, atol=1e-4, rtol=1e-4)

    print("KERNEL_OK")
</pallas_src>

<mosaic_0001>
module attributes {stable_mosaic.version = 11 : i64} {
  func.func @_fuconv2d_kernel_fused(%arg0: i32, %arg1: memref<8x128xf32, #tpu.memory_space<vmem>>, %arg2: memref<128x128xf32, #tpu.memory_space<vmem>>, %arg3: memref<1x128xf32, #tpu.memory_space<vmem>>, %arg4: memref<8x128xf32, #tpu.memory_space<vmem>>) attributes {dimension_semantics = [#tpu.dimension_semantics<parallel>], iteration_bounds = array<i64: 1>, scalar_prefetch = 0 : i64, scratch_operands = 0 : i64, tpu.core_type = #tpu.core_type<tc>, window_params = [{transform_indices = @transform_0, window_bounds = array<i64: 8, 128>}, {pipeline_mode = #tpu.pipeline_mode<synchronous>, transform_indices = @transform_1, window_bounds = array<i64: 128, 128>}, {pipeline_mode = #tpu.pipeline_mode<synchronous>, transform_indices = @transform_2, window_bounds = array<i64: 1, 128>}, {transform_indices = @transform_3, window_bounds = array<i64: 8, 128>}]} {
    %c0 = arith.constant 0 : index
    %c0_0 = arith.constant 0 : index
    %0 = vector.load %arg1[%c0, %c0_0] : memref<8x128xf32, #tpu.memory_space<vmem>>, vector<8x128xf32>
    %c0_1 = arith.constant 0 : index
    %c0_2 = arith.constant 0 : index
    %1 = vector.load %arg2[%c0_1, %c0_2] : memref<128x128xf32, #tpu.memory_space<vmem>>, vector<128x128xf32>
    %cst = arith.constant dense<0.000000e+00> : vector<8x128xf32>
    %2 = tpu.matmul %0, %1, %cst {dimension_numbers = #tpu.dot_dimension_numbers<[1], [0], [0], [1], [0, 0, 1, 1], [], []>} : vector<8x128xf32>, vector<128x128xf32>, vector<8x128xf32> -> vector<8x128xf32>
    %c0_3 = arith.constant 0 : index
    %c0_4 = arith.constant 0 : index
    %3 = vector.load %arg3[%c0_3, %c0_4] : memref<1x128xf32, #tpu.memory_space<vmem>>, vector<1x128xf32>
    %4 = vector.broadcast %3 : vector<1x128xf32> to vector<8x128xf32>
    %5 = arith.addf %2, %4 : vector<8x128xf32>
    %cst_5 = arith.constant 0.000000e+00 : f32
    %6 = vector.broadcast %cst_5 : f32 to vector<8x128xf32>
    %7 = arith.cmpf ogt, %5, %6 : vector<8x128xf32>
    %cst_6 = arith.constant 2.000000e-01 : f32
    %8 = vector.broadcast %cst_6 : f32 to vector<8x128xf32>
    %9 = arith.mulf %8, %5 : vector<8x128xf32>
    %10 = arith.select %7, %5, %9 : vector<8x128xi1>, vector<8x128xf32>
    %11 = arith.mulf %10, %10 : vector<8x128xf32>
    %cst_7 = arith.constant dense<0.000000e+00> : vector<8xf32>
    %12 = vector.multi_reduction <add>, %11, %cst_7 [1] : vector<8x128xf32> to vector<8xf32>
    %13 = vector.shape_cast %12 : vector<8xf32> to vector<8x1xf32>
    %cst_8 = arith.constant 1.562500e-02 : f32
    %14 = vector.broadcast %cst_8 : f32 to vector<8x1xf32>
    %15 = arith.mulf %13, %14 : vector<8x1xf32>
    %cst_9 = arith.constant 9.99999993E-9 : f32
    %16 = vector.broadcast %cst_9 : f32 to vector<8x1xf32>
    %17 = arith.addf %15, %16 : vector<8x1xf32>
    %18 = math.rsqrt %17 : vector<8x1xf32>
    %19 = vector.broadcast %18 : vector<8x1xf32> to vector<8x128xf32>
    %20 = arith.mulf %10, %19 : vector<8x128xf32>
    %c0_10 = arith.constant 0 : index
    %c0_11 = arith.constant 0 : index
    %21 = vector.load %arg4[%c0_10, %c0_11] : memref<8x128xf32, #tpu.memory_space<vmem>>, vector<8x128xf32>
    tpu.vector_store %arg4[%c0_10, %c0_11], %20 {strides = array<i32>} : memref<8x128xf32, #tpu.memory_space<vmem>>, vector<8x128xf32>,
    return
  }
  func.func @transform_0(%arg0: i32) -> (i32, i32) {
    %c0_i32 = arith.constant 0 : i32
    %c0_i32_0 = arith.constant 0 : i32
    return %arg0, %c0_i32 : i32, i32
  }
  func.func @transform_1(%arg0: i32) -> (i32, i32) {
    %c0_i32 = arith.constant 0 : i32
    %c0_i32_0 = arith.constant 0 : i32
    %c0_i32_1 = arith.constant 0 : i32
    return %c0_i32, %c0_i32_0 : i32, i32
  }
  func.func @transform_2(%arg0: i32) -> (i32, i32) {
    %c0_i32 = arith.constant 0 : i32
    %c0_i32_0 = arith.constant 0 : i32
    %c0_i32_1 = arith.constant 0 : i32
    return %c0_i32, %c0_i32_0 : i32, i32
  }
  func.func @transform_3(%arg0: i32) -> (i32, i32) {
    %c0_i32 = arith.constant 0 : i32
    %c0_i32_0 = arith.constant 0 : i32
    return %arg0, %c0_i32 : i32, i32
  }
}

</mosaic_0001>

<bundles_post_ra>
// kernel: tpu_custom_call.1
= control target key start
LH: loop header
LB: loop body
LE: loop exit
PB: predicated region body
PF: predicated region fallthrough
CT: control target
= control target key end

     0   :  { %8 = vsyncpa [#allocation3], 0  ;;  %s247_s0 = inlined_call_operand.hbm [shape: f32[8,128], index: 0, kind: input, shape index: {}]   ;;  %s248_s1 = inlined_call_operand.hbm [shape: f32[128,128], index: 1, kind: input, shape index: {}]   ;;  %s249_s2 = inlined_call_operand.vmem [shape: f32[1,128], index: 2, kind: input, shape index: {}]   ;;  %s250_s3 = inlined_call_operand.hbm [shape: f32[8,128], index: 3, kind: output, shape index: {}]  }
   0x1   :  { %9 = vsyncpa [#allocation6], 0 }
   0x2   :  { %10 = vsyncpa [#allocation4], 0  ;;  %s16_s14 = sshll.u32 %s247_s0, 4  ;;  %s210_s15 = smov [#allocation2]   ;;  %s17_s14 = int_to_ptr.hbm [resolvable:$true] %s16_s14 }
   0x3   :  { %s18_s16 = sshll.u32 %s210_s15, 4  ;;  %s26_s19 = sshll.u32 %s248_s1, 4  ;;  %s19_s16 = int_to_ptr.vmem [resolvable:$true] %s18_s16  ;;  %s27_s19 = int_to_ptr.hbm [resolvable:$true] %s26_s19 }
   0x4   :  { %21 = dma.hbm_to_vmem [thread:$0]  %s17_s14, 128, %s19_s16, [#allocation3]  }
   0x5   :  { %s211_s20 = smov [#allocation5]   ;;  %s212_s22 = smov 128  }
   0x6   :  { %s28_s21 = sshll.u32 %s211_s20, 4  ;;  %s213_s23 = smov 8   ;;  %s29_s21 = int_to_ptr.vmem [resolvable:$true] %s28_s21 }
   0x7   :  { %34 = dma.hbm_to_vmem [thread:$0]  %s27_s19, 2048, %s29_s21, [#allocation6], %s212_s22, %s212_s22, %s213_s23  }
   0x8   :  { %204 = dma.done.wait [#allocation3], 128  }
   0x9   :  { %205 = vsyncadd [#allocation3], 4294967168 }
   0xa   :  { %206 = dma.done.wait [#allocation6], 2048  }
   0xb   :  { %207 = vsyncadd [#allocation6], 4294965248  ;;  %v61_v0 = vld [vmem:[#allocation5 + $0x78] sm:$0xff]  ;;  %v60_v1 = vld [vmem:[#allocation5 + $0x70] sm:$0xff]  ;;  %s113_s27 = sshll.u32 %s250_s3, 4  ;;  %s114_s27 = int_to_ptr.hbm [resolvable:$true] %s113_s27 }
   0xc   :  { %66 = vmatpush.msra.mxu0 %v61_v0  ;;  %v59_v2 = vld [vmem:[#allocation5 + $0x68] sm:$0xff]  ;;  %v58_v3 = vld [vmem:[#allocation5 + $0x60] sm:$0xff]  ;;  %v57_v4 = vld [vmem:[#allocation5 + $0x58] sm:$0xff] }
   0xd   :  { %v56_v5 = vld [vmem:[#allocation5 + $0x50] sm:$0xff]  ;;  %v55_v6 = vld [vmem:[#allocation5 + $0x48] sm:$0xff]  ;;  %v54_v7 = vld [vmem:[#allocation5 + $0x40] sm:$0xff] }
   0xe   :  { %67 = vmatpush.msra.mxu0 %v60_v1  ;;  %v53_v8 = vld [vmem:[#allocation5 + $0x38] sm:$0xff]  ;;  %v52_v9 = vld [vmem:[#allocation5 + $0x30] sm:$0xff]  ;;  %v51_v10 = vld [vmem:[#allocation5 + $0x28] sm:$0xff] }
   0xf   :  { %v50_v11 = vld [vmem:[#allocation5 + $0x20] sm:$0xff]  ;;  %v49_v12 = vld [vmem:[#allocation5 + $0x18] sm:$0xff]  ;;  %v48_v13 = vld [vmem:[#allocation5 + $0x10] sm:$0xff] }
  0x10   :  { %68 = vmatpush.msra.mxu0 %v59_v2  ;;  %v47_v14 = vld [vmem:[#allocation5 + $0x8] sm:$0xff]  ;;  %v46_v15 = vld [vmem:[#allocation5] sm:$0xff]  ;;  %v45_v16 = vld [vmem:[#allocation2] sm:$0xff] }
  0x11   :  { %v129_v17 = vld [vmem:[%s249_s2] ss:$0 sm:$0xff]  ;;  %s214_s2 = smov [#allocation7]  }
  0x12   :  { %69 = vmatpush.msra.mxu0 %v58_v3  ;;  %s111_s24 = sshll.u32 %s214_s2, 4  ;;  %s112_s24 = int_to_ptr.vmem [resolvable:$true] %s111_s24 }
  0x14   :  { %70 = vmatpush.msra.mxu0 %v57_v4 }
  0x16   :  { %71 = vmatpush.msra.mxu0 %v56_v5 }
  0x18   :  { %72 = vmatpush.msra.mxu0 %v55_v6 }
  0x1a   :  { %73 = vmatpush.msra.mxu0 %v54_v7 }
  0x1c   :  { %74 = vmatpush.msra.mxu0 %v53_v8 }
  0x1e   :  { %75 = vmatpush.msra.mxu0 %v52_v9 }
  0x20   :  { %76 = vmatpush.msra.mxu0 %v51_v10 }
  0x22   :  { %77 = vmatpush.msra.mxu0 %v50_v11 }
  0x24   :  { %78 = vmatpush.msra.mxu0 %v49_v12 }
  0x26   :  { %79 = vmatpush.msra.mxu0 %v48_v13 }
  0x28   :  { %80 = vmatpush.msra.mxu0 %v47_v14 }
  0x2a   :  { %81 = vmatpush.msra.mxu0 %v46_v15 }
  0x2b   :  { %82 = vmatmul.f32.vlgmr.msra.gmra.mxu0 %v45_v16 }
  0xa8   :  { %v83_v18 = vpop.f32.mrf.mxu0 }
  0xa9   :  { %v84_v19 = vadd.f32 %v129_v17, %v83_v18 }
  0xab   :  { %v87_v20 = vmul.f32 0.2, %v84_v19  ;;  %vm86_vm0 = vcmp.gt.f32.partialorder %v84_v19, 0.0 }
  0xad   :  { %v88_v21 = vsel %vm86_vm0, %v84_v19, %v87_v20 }
  0xae   :  { %v89_v22 = vmul.f32 %v88_v21, %v88_v21 }
  0xb0   :  { %90 = vadd.xlane.f32.xlu0 %v89_v22 }
 0x123   :  { %v91_v23 = vpop.xlane.xlu0 %90 }
 0x124   :  { %v92_v24 = vmul.f32 0.015625, %v91_v23 }
 0x126   :  { %v93_v25 = vadd.f32 1e-08, %v92_v24 }
 0x128   :  { %130 = vrsqrt.f32 %v93_v25  ;;  %vm100_vm2 = vweird.f32 %v93_v25 }
 0x12e   :  { %v131_v26 = vpop.eup %130 }
 0x12f   :  { %v95_v27 = vmul.f32 %v131_v26, %v93_v25  ;;  %vm101_vm1 = vweird.f32 %v131_v26 }
 0x130   :  { %vm102_vm3 = vmor %vm100_vm2, %vm101_vm1 }
 0x131   :  { %v96_v28 = vmul.f32 %v131_v26, %v95_v27 }
 0x133   :  { %v97_v29 = vmul.f32 0.5, %v96_v28 }
 0x135   :  { %v98_v30 = vsub.f32 1.5, %v97_v29 }
 0x137   :  { %v99_v31 = vmul.f32 %v131_v26, %v98_v30 }
 0x139   :  { %v103_v32 = vsel %vm102_vm3, %v131_v26, %v99_v31 }
 0x13a   :  { %v104_v33 = vmul.f32 %v103_v32, %v88_v21 }
 0x13c   :  { %105 = vst [vmem:[#allocation7] sm:$0xff] %v104_v33 }
 0x13d   :  { %116 = dma.vmem_to_hbm [thread:$0]  %s112_s24, 128, %s114_s27, [#allocation4]  }
 0x13e   :  { %208 = dma.done.wait [#allocation4], 128  }
 0x13f   :  { %209 = vsyncadd [#allocation4], 4294967168 }
 0x140   :  { %121 = vsyncpa [#allocation3], 1 }
 0x141   :  { %122 = vsyncpa [#allocation6], 1 }
 0x142   :  { %123 = vsyncpa [#allocation4], 1 }

</bundles_post_ra>
